<compile_context>
chip_gen: v7x
topology: tpu7x:2x2x1
jax: 0.10.0
libtpu: 0.0.40
codegen_flags: <defaults>
</compile_context>

<pallas_src>
import jax
import jax.numpy as jnp
from jax.experimental import pallas as pl
from jax.experimental.pallas import tpu as pltpu

BN_EPS = 1e-5


def _pick_tile(total, target, mult=8):
    """Largest multiple of `mult` that divides `total` and is <= target, else total."""
    cands = [t for t in range(mult, min(total, target) + 1, mult) if total % t == 0]
    return max(cands) if cands else total


def _conv_stats_kernel(p0_ref, p1_ref, w0_ref, w1_ref, b_ref, y_ref, stats_ref):
    # p0_ref, p1_ref : (TH, W, 6*Cin) bf16  -- per-row-parity 2x3 im2col patches
    # w0_ref, w1_ref : (2*Cout, 6*Cin) bf16 -- folded weights, channel-major
    # b_ref          : (2*Cout, 1) f32      -- conv bias, tiled over col parities
    # y_ref          : (2, 2*Cout, TH*W) bf16 -- pre-BN intermediate (phase-separated)
    # stats_ref      : (2*Cout, 2) f32      -- [:, 0] = sum, [:, 1] = sum of squares
    th, w, k6 = p0_ref.shape
    m = th * w

    p0 = p0_ref[...].reshape(m, k6)          # merge leading dims only (minor unchanged)
    p1 = p1_ref[...].reshape(m, k6)

    # (2*Cout, 6*Cin) x (TH*W, 6*Cin)^T -> (2*Cout, TH*W): one MXU call per row
    # parity, lane-dense result (minor dim = TH*W >= 128), f32 accumulation.
    dn = (((1,), (1,)), ((), ()))
    r0 = jax.lax.dot_general(w0_ref[...], p0, dn,
                             preferred_element_type=jnp.float32) + b_ref[...]
    r1 = jax.lax.dot_general(w1_ref[...], p1, dn,
                             preferred_element_type=jnp.float32) + b_ref[...]

    # lane-dense stores of the pre-BN intermediate (bf16)
    y_ref[0] = r0.astype(y_ref.dtype)
    y_ref[1] = r1.astype(y_ref.dtype)

    # per-grid-step partial BatchNorm statistics (taken from the f32 accumulators)
    s = jnp.sum(r0, axis=1, keepdims=True) + jnp.sum(r1, axis=1, keepdims=True)
    sq = jnp.sum(r0 * r0, axis=1, keepdims=True) + jnp.sum(r1 * r1, axis=1, keepdims=True)
    stats_ref[...] = jnp.concatenate([s, sq], axis=1)


def _bn_relu_kernel(y_ref, scale_ref, shift_ref, o_ref):
    # y_ref: (TR, H*W) bf16; scale/shift: (TR, 1) f32 (per-row = per-channel); o_ref f32
    y = y_ref[...].astype(jnp.float32)
    o_ref[...] = jnp.maximum(y * scale_ref[...] + shift_ref[...], 0.0)


def d_up_forward(x_nchw, w_conv, bias, gamma, beta, *, scale_factor=2,
                 eps=BN_EPS, block_rows=None, block_rows_bn=None):
    """Forward of d_up.  x_nchw: (N, Cin, H, W); w_conv: (Cout, Cin, 3, 3) (Conv2d OIHW);
    bias/gamma/beta: (Cout,).  Returns NCHW float32."""
    assert scale_factor == 2, "kernel implements the 2x sub-pixel decomposition"
    # TODO(synk): generalize the phase decomposition to other integer scale factors.
    n, cin, h, w = x_nchw.shape
    cout = w_conv.shape[0]
    k6 = 6 * cin           # folded contraction: 2 row taps x 3 col taps x Cin
    c2 = 2 * cout          # both column parities folded into the matmul N dim

    th = block_rows if block_rows is not None else _pick_tile(h, 64)
    assert h % th == 0
    ht = h // th

    # ---------------- wrapper glue (plain XLA): layout, im2col, folded weights ----
    x_nhwc = jnp.transpose(x_nchw, (0, 2, 3, 1)).astype(jnp.float32)
    xpad = jnp.pad(x_nhwc, ((0, 0), (1, 1), (1, 1), (0, 0))).astype(jnp.bfloat16)

    def row_phase_patches(a):
        # 2x3 neighborhood of the (1-px padded) low-res input, taps folded into channels
        slabs = [xpad[:, a + dr:a + dr + h, dc:dc + w, :]
                 for dr in range(2) for dc in range(3)]
        return jnp.concatenate(slabs, axis=-1)               # (N, H, W, 6*Cin)

    p0 = row_phase_patches(0)
    p1 = row_phase_patches(1)

    # wf[a, dr, dc, ci, b, co] sums the 3x3 conv taps that read xpad[i+a+dr, j+dc]
    # when producing upsampled output pixel (2i+a, 2j+b) after nearest upsampling.
    w_hwio = jnp.transpose(w_conv, (2, 3, 1, 0)).astype(jnp.float32)   # (3,3,Cin,Cout)
    wf = jnp.zeros((2, 2, 3, cin, 2, cout), jnp.float32)
    for a in range(2):
        for kh in range(3):
            dr = 1 + (a + kh - 1) // 2 - a          # row tap offset in {0,1}
            for b in range(2):
                for kw in range(3):
                    dc = 1 + (b + kw - 1) // 2      # col tap offset in {0,1,2}
                    wf = wf.at[a, dr, dc, :, b, :].add(w_hwio[kh, kw])
    w0 = wf[0].reshape(k6, c2).T.astype(jnp.bfloat16)          # (2*Cout, 6*Cin)
    w1 = wf[1].reshape(k6, c2).T.astype(jnp.bfloat16)
    b2 = jnp.tile(bias.astype(jnp.float32), 2).reshape(c2, 1)  # [b=0 | b=1] groups

    # ---------------- kernel 1: phase-decomposed conv + partial BN stats ----------
    y_pre, stats = pl.pallas_call(
        _conv_stats_kernel,
        out_shape=(jax.ShapeDtypeStruct((n, 2, c2, h * w), jnp.bfloat16),
                   jax.ShapeDtypeStruct((n, ht, c2, 2), jnp.float32)),
        grid_spec=pltpu.PrefetchScalarGridSpec(
            num_scalar_prefetch=0,
            grid=(n, ht),
            in_specs=[
                pl.BlockSpec((None, th, w, k6), lambda bi, ti: (bi, ti, 0, 0)),
                pl.BlockSpec((None, th, w, k6), lambda bi, ti: (bi, ti, 0, 0)),
                pl.BlockSpec((c2, k6), lambda bi, ti: (0, 0)),
                pl.BlockSpec((c2, k6), lambda bi, ti: (0, 0)),
                pl.BlockSpec((c2, 1), lambda bi, ti: (0, 0)),
            ],
            out_specs=(
                pl.BlockSpec((None, 2, c2, th * w), lambda bi, ti: (bi, 0, 0, ti)),
                pl.BlockSpec((None, None, c2, 2), lambda bi, ti: (bi, ti, 0, 0)),
            ),
        ),
        compiler_params=pltpu.CompilerParams(
            dimension_semantics=("parallel", "parallel"),
            vmem_limit_bytes=64 * 1024 * 1024),
    )(p0, p1, w0, w1, b2)

    # ------------- wrapper glue: fold batch statistics into scale / shift ---------
    count = float(n * (2 * h) * (2 * w))
    ch_sum = stats[..., 0].reshape(n * ht, 2, cout).sum(axis=(0, 1))
    ch_sq = stats[..., 1].reshape(n * ht, 2, cout).sum(axis=(0, 1))
    mean = ch_sum / count
    var = ch_sq / count - mean * mean             # biased variance (PyTorch train-mode BN)
    invstd = jax.lax.rsqrt(var + eps)
    scale = gamma.astype(jnp.float32) * invstd
    shift = beta.astype(jnp.float32) - mean * scale

    # ---------------- kernel 2: BN + ReLU (lane-dense elementwise) ----------------
    rows = n * 2 * c2                  # (batch, row parity, col parity, channel) rows
    cols = h * w
    tr = block_rows_bn if block_rows_bn is not None else _pick_tile(rows, 512)
    assert rows % tr == 0
    y2d = y_pre.reshape(rows, cols)
    scale_rows = jnp.tile(scale, rows // cout).reshape(rows, 1)
    shift_rows = jnp.tile(shift, rows // cout).reshape(rows, 1)

    out2d = pl.pallas_call(
        _bn_relu_kernel,
        out_shape=jax.ShapeDtypeStruct((rows, cols), jnp.float32),
        grid_spec=pltpu.PrefetchScalarGridSpec(
            num_scalar_prefetch=0,
            grid=(rows // tr,),
            in_specs=[
                pl.BlockSpec((tr, cols), lambda i: (i, 0)),
                pl.BlockSpec((tr, 1), lambda i: (i, 0)),
                pl.BlockSpec((tr, 1), lambda i: (i, 0)),
            ],
            out_specs=pl.BlockSpec((tr, cols), lambda i: (i, 0)),
        ),
        compiler_params=pltpu.CompilerParams(
            dimension_semantics=("parallel",),
            vmem_limit_bytes=64 * 1024 * 1024),
    )(y2d, scale_rows, shift_rows)

    # -------- wrapper glue: de-interleave parities while converting to NCHW -------
    out6 = out2d.reshape(n, 2, 2, cout, h, w)                 # (n, a, b, ch, r, c)
    out = jnp.transpose(out6, (0, 3, 4, 1, 5, 2))             # (n, ch, r, a, c, b)
    return out.reshape(n, cout, 2 * h, 2 * w)


if __name__ == "__main__":
    key = jax.random.PRNGKey(0)
    k1, k2, k3, k4, k5 = jax.random.split(key, 5)

    N, CH_IN, CH_OUT, H, W = 2, 8, 8, 16, 16
    x = jax.random.normal(k1, (N, CH_IN, H, W), jnp.float32)                 # NCHW
    w_conv = 0.1 * jax.random.normal(k2, (CH_OUT, CH_IN, 3, 3), jnp.float32) # Conv2d OIHW
    bias = 0.1 * jax.random.normal(k3, (CH_OUT,), jnp.float32)
    gamma = 1.0 + 0.1 * jax.random.normal(k4, (CH_OUT,), jnp.float32)
    beta = 0.1 * jax.random.normal(k5, (CH_OUT,), jnp.float32)

    # small shapes: force a few row / BN tiles so the tiled grids are exercised
    out = jax.block_until_ready(
        d_up_forward(x, w_conv, bias, gamma, beta, scale_factor=2,
                     block_rows=8, block_rows_bn=32))
    assert out.shape == (N, CH_OUT, 2 * H, 2 * W), out.shape

    # plain-JAX reference: nearest Upsample(x2) -> Conv2d(3,1,1) -> batch-stat BN -> ReLU
    x_nhwc = jnp.transpose(x, (0, 2, 3, 1))
    x_up = jnp.repeat(jnp.repeat(x_nhwc, 2, axis=1), 2, axis=2)
    w_hwio = jnp.transpose(w_conv, (2, 3, 1, 0))
    ref = jax.lax.conv_general_dilated(
        x_up, w_hwio, window_strides=(1, 1), padding=[(1, 1), (1, 1)],
        dimension_numbers=("NHWC", "HWIO", "NHWC"),
        precision=jax.lax.Precision.HIGHEST) + bias
    mean = jnp.mean(ref, axis=(0, 1, 2))
    var = jnp.mean((ref - mean) ** 2, axis=(0, 1, 2))
    ref = jnp.maximum((ref - mean) * jax.lax.rsqrt(var + BN_EPS) * gamma + beta, 0.0)
    ref = jnp.transpose(ref, (0, 3, 1, 2))

    err = float(jnp.max(jnp.abs(out - ref)))
    assert err < 3e-2, f"max abs error {err}"
    print("KERNEL_OK")
</pallas_src>

<mosaic_0001>
module attributes {stable_mosaic.version = 11 : i64} {
  func.func @_conv_stats_kernel(%arg0: i32, %arg1: i32, %arg2: memref<1x8x16x48xbf16, #tpu.memory_space<vmem>>, %arg3: memref<1x8x16x48xbf16, #tpu.memory_space<vmem>>, %arg4: memref<16x48xbf16, #tpu.memory_space<vmem>>, %arg5: memref<16x48xbf16, #tpu.memory_space<vmem>>, %arg6: memref<16x1xf32, #tpu.memory_space<vmem>>, %arg7: memref<1x2x16x128xbf16, #tpu.memory_space<vmem>>, %arg8: memref<1x1x16x2xf32, #tpu.memory_space<vmem>>) attributes {dimension_semantics = [#tpu.dimension_semantics<parallel>, #tpu.dimension_semantics<parallel>], iteration_bounds = array<i64: 2, 2>, scalar_prefetch = 0 : i64, scratch_operands = 0 : i64, tpu.core_type = #tpu.core_type<tc>, window_params = [{transform_indices = @transform_0, window_bounds = array<i64: 1, 8, 16, 48>}, {transform_indices = @transform_1, window_bounds = array<i64: 1, 8, 16, 48>}, {pipeline_mode = #tpu.pipeline_mode<synchronous>, transform_indices = @transform_2, window_bounds = array<i64: 16, 48>}, {pipeline_mode = #tpu.pipeline_mode<synchronous>, transform_indices = @transform_3, window_bounds = array<i64: 16, 48>}, {pipeline_mode = #tpu.pipeline_mode<synchronous>, transform_indices = @transform_4, window_bounds = array<i64: 16, 1>}, {transform_indices = @transform_5, window_bounds = array<i64: 1, 2, 16, 128>}, {transform_indices = @transform_6, window_bounds = array<i64: 1, 1, 16, 2>}]} {
    %c0 = arith.constant 0 : index
    %c0_0 = arith.constant 0 : index
    %c0_1 = arith.constant 0 : index
    %c0_2 = arith.constant 0 : index
    %0 = vector.load %arg2[%c0, %c0_0, %c0_1, %c0_2] : memref<1x8x16x48xbf16, #tpu.memory_space<vmem>>, vector<1x8x16x48xbf16>
    %1 = vector.shape_cast %0 : vector<1x8x16x48xbf16> to vector<8x16x48xbf16>
    %2 = vector.shape_cast %1 : vector<8x16x48xbf16> to vector<128x48xbf16>
    %c0_3 = arith.constant 0 : index
    %c0_4 = arith.constant 0 : index
    %c0_5 = arith.constant 0 : index
    %c0_6 = arith.constant 0 : index
    %3 = vector.load %arg3[%c0_3, %c0_4, %c0_5, %c0_6] : memref<1x8x16x48xbf16, #tpu.memory_space<vmem>>, vector<1x8x16x48xbf16>
    %4 = vector.shape_cast %3 : vector<1x8x16x48xbf16> to vector<8x16x48xbf16>
    %5 = vector.shape_cast %4 : vector<8x16x48xbf16> to vector<128x48xbf16>
    %c0_7 = arith.constant 0 : index
    %c0_8 = arith.constant 0 : index
    %6 = vector.load %arg4[%c0_7, %c0_8] : memref<16x48xbf16, #tpu.memory_space<vmem>>, vector<16x48xbf16>
    %cst = arith.constant dense<0.000000e+00> : vector<16x128xf32>
    %7 = tpu.matmul %6, %2, %cst {dimension_numbers = #tpu.dot_dimension_numbers<[1], [1], [0], [0], [0, 0, 1, 0], [], []>} : vector<16x48xbf16>, vector<128x48xbf16>, vector<16x128xf32> -> vector<16x128xf32>
    %c0_9 = arith.constant 0 : index
    %c0_10 = arith.constant 0 : index
    %8 = vector.load %arg6[%c0_9, %c0_10] : memref<16x1xf32, #tpu.memory_space<vmem>>, vector<16x1xf32>
    %9 = vector.broadcast %8 : vector<16x1xf32> to vector<16x128xf32>
    %10 = arith.addf %7, %9 : vector<16x128xf32>
    %c0_11 = arith.constant 0 : index
    %c0_12 = arith.constant 0 : index
    %11 = vector.load %arg5[%c0_11, %c0_12] : memref<16x48xbf16, #tpu.memory_space<vmem>>, vector<16x48xbf16>
    %cst_13 = arith.constant dense<0.000000e+00> : vector<16x128xf32>
    %12 = tpu.matmul %11, %5, %cst_13 {dimension_numbers = #tpu.dot_dimension_numbers<[1], [1], [0], [0], [0, 0, 1, 0], [], []>} : vector<16x48xbf16>, vector<128x48xbf16>, vector<16x128xf32> -> vector<16x128xf32>
    %c0_14 = arith.constant 0 : index
    %c0_15 = arith.constant 0 : index
    %13 = vector.load %arg6[%c0_14, %c0_15] : memref<16x1xf32, #tpu.memory_space<vmem>>, vector<16x1xf32>
    %14 = vector.broadcast %13 : vector<16x1xf32> to vector<16x128xf32>
    %15 = arith.addf %12, %14 : vector<16x128xf32>
    %16 = arith.truncf %10 : vector<16x128xf32> to vector<16x128xbf16>
    %c0_16 = arith.constant 0 : index
    %c0_17 = arith.constant 0 : index
    %c0_18 = arith.constant 0 : index
    %c0_19 = arith.constant 0 : index
    %17 = vector.load %arg7[%c0_16, %c0_17, %c0_18, %c0_19] : memref<1x2x16x128xbf16, #tpu.memory_space<vmem>>, vector<1x1x16x128xbf16>
    %18 = vector.shape_cast %17 : vector<1x1x16x128xbf16> to vector<16x128xbf16>
    %19 = vector.shape_cast %16 : vector<16x128xbf16> to vector<1x1x16x128xbf16>
    tpu.vector_store %arg7[%c0_16, %c0_17, %c0_18, %c0_19], %19 {strides = array<i32>} : memref<1x2x16x128xbf16, #tpu.memory_space<vmem>>, vector<1x1x16x128xbf16>,
    %20 = arith.truncf %15 : vector<16x128xf32> to vector<16x128xbf16>
    %c0_20 = arith.constant 0 : index
    %c1 = arith.constant 1 : index
    %c0_21 = arith.constant 0 : index
    %c0_22 = arith.constant 0 : index
    %21 = vector.load %arg7[%c0_20, %c1, %c0_21, %c0_22] : memref<1x2x16x128xbf16, #tpu.memory_space<vmem>>, vector<1x1x16x128xbf16>
    %22 = vector.shape_cast %21 : vector<1x1x16x128xbf16> to vector<16x128xbf16>
    %23 = vector.shape_cast %20 : vector<16x128xbf16> to vector<1x1x16x128xbf16>
    tpu.vector_store %arg7[%c0_20, %c1, %c0_21, %c0_22], %23 {strides = array<i32>} : memref<1x2x16x128xbf16, #tpu.memory_space<vmem>>, vector<1x1x16x128xbf16>,
    %cst_23 = arith.constant dense<0.000000e+00> : vector<16xf32>
    %24 = vector.multi_reduction <add>, %10, %cst_23 [1] : vector<16x128xf32> to vector<16xf32>
    %25 = vector.shape_cast %24 : vector<16xf32> to vector<16x1xf32>
    %cst_24 = arith.constant dense<0.000000e+00> : vector<16xf32>
    %26 = vector.multi_reduction <add>, %15, %cst_24 [1] : vector<16x128xf32> to vector<16xf32>
    %27 = vector.shape_cast %26 : vector<16xf32> to vector<16x1xf32>
    %28 = arith.addf %25, %27 : vector<16x1xf32>
    %29 = arith.mulf %10, %10 : vector<16x128xf32>
    %cst_25 = arith.constant dense<0.000000e+00> : vector<16xf32>
    %30 = vector.multi_reduction <add>, %29, %cst_25 [1] : vector<16x128xf32> to vector<16xf32>
    %31 = vector.shape_cast %30 : vector<16xf32> to vector<16x1xf32>
    %32 = arith.mulf %15, %15 : vector<16x128xf32>
    %cst_26 = arith.constant dense<0.000000e+00> : vector<16xf32>
    %33 = vector.multi_reduction <add>, %32, %cst_26 [1] : vector<16x128xf32> to vector<16xf32>
    %34 = vector.shape_cast %33 : vector<16xf32> to vector<16x1xf32>
    %35 = arith.addf %31, %34 : vector<16x1xf32>
    %36 = tpu.concatenate %28, %35 in 1 : vector<16x1xf32>, vector<16x1xf32> -> vector<16x2xf32>
    %c0_27 = arith.constant 0 : index
    %c0_28 = arith.constant 0 : index
    %c0_29 = arith.constant 0 : index
    %c0_30 = arith.constant 0 : index
    %37 = vector.load %arg8[%c0_27, %c0_28, %c0_29, %c0_30] : memref<1x1x16x2xf32, #tpu.memory_space<vmem>>, vector<1x1x16x2xf32>
    %38 = vector.shape_cast %37 : vector<1x1x16x2xf32> to vector<16x2xf32>
    %39 = vector.shape_cast %36 : vector<16x2xf32> to vector<1x1x16x2xf32>
    tpu.vector_store %arg8[%c0_27, %c0_28, %c0_29, %c0_30], %39 {strides = array<i32>} : memref<1x1x16x2xf32, #tpu.memory_space<vmem>>, vector<1x1x16x2xf32>,
    return
  }
  func.func @transform_0(%arg0: i32, %arg1: i32) -> (i32, i32, i32, i32) {
    %c0_i32 = arith.constant 0 : i32
    %c0_i32_0 = arith.constant 0 : i32
    %c0_i32_1 = arith.constant 0 : i32
    return %arg0, %arg1, %c0_i32, %c0_i32_0 : i32, i32, i32, i32
  }
  func.func @transform_1(%arg0: i32, %arg1: i32) -> (i32, i32, i32, i32) {
    %c0_i32 = arith.constant 0 : i32
    %c0_i32_0 = arith.constant 0 : i32
    %c0_i32_1 = arith.constant 0 : i32
    return %arg0, %arg1, %c0_i32, %c0_i32_0 : i32, i32, i32, i32
  }
  func.func @transform_2(%arg0: i32, %arg1: i32) -> (i32, i32) {
    %c0_i32 = arith.constant 0 : i32
    %c0_i32_0 = arith.constant 0 : i32
    %c0_i32_1 = arith.constant 0 : i32
    return %c0_i32, %c0_i32_0 : i32, i32
  }
  func.func @transform_3(%arg0: i32, %arg1: i32) -> (i32, i32) {
    %c0_i32 = arith.constant 0 : i32
    %c0_i32_0 = arith.constant 0 : i32
    %c0_i32_1 = arith.constant 0 : i32
    return %c0_i32, %c0_i32_0 : i32, i32
  }
  func.func @transform_4(%arg0: i32, %arg1: i32) -> (i32, i32) {
    %c0_i32 = arith.constant 0 : i32
    %c0_i32_0 = arith.constant 0 : i32
    %c0_i32_1 = arith.constant 0 : i32
    return %c0_i32, %c0_i32_0 : i32, i32
  }
  func.func @transform_5(%arg0: i32, %arg1: i32) -> (i32, i32, i32, i32) {
    %c0_i32 = arith.constant 0 : i32
    %c0_i32_0 = arith.constant 0 : i32
    %c0_i32_1 = arith.constant 0 : i32
    return %arg0, %c0_i32, %c0_i32_0, %arg1 : i32, i32, i32, i32
  }
  func.func @transform_6(%arg0: i32, %arg1: i32) -> (i32, i32, i32, i32) {
    %c0_i32 = arith.constant 0 : i32
    %c0_i32_0 = arith.constant 0 : i32
    %c0_i32_1 = arith.constant 0 : i32
    return %arg0, %arg1, %c0_i32, %c0_i32_0 : i32, i32, i32, i32
  }
}

</mosaic_0001>

<bundles_post_ra>
// kernel: tpu_custom_call.1
= control target key start
LH: loop header
LB: loop body
LE: loop exit
PB: predicated region body
PF: predicated region fallthrough
CT: control target
= control target key end

     0   :  { %s2020_s0 = inlined_call_operand.hbm [shape: bf16[2,16,16,48], index: 0, kind: input, shape index: {}]   ;;  %s2021_s1 = inlined_call_operand.hbm [shape: bf16[2,16,16,48], index: 1, kind: input, shape index: {}]   ;;  %s2022_s2 = inlined_call_operand.hbm [shape: bf16[16,48], index: 2, kind: input, shape index: {}]   ;;  %s2023_s3 = inlined_call_operand.hbm [shape: bf16[16,48], index: 3, kind: input, shape index: {}]   ;;  %s2024_s4 = inlined_call_operand.hbm [shape: f32[16,1], index: 4, kind: input, shape index: {}]   ;;  %s2025_s5 = inlined_call_operand.hbm [shape: bf16[2,2,16,256], index: 5, kind: output, shape index: {0}]   ;;  %s2026_s6 = inlined_call_operand.hbm [shape: f32[2,2,16,2], index: 6, kind: output, shape index: {1}]  }
   0x1   :  { %2040 = sst [smem:[#allocation24_spill]] %s2020_s0 }
   0x2   :  { %2041 = sst [smem:[#allocation25_spill]] %s2022_s2 }
   0x3   :  { %2042 = sst [smem:[#allocation26_spill]] %s2023_s3 }
   0x4   :  { %2043 = sst [smem:[#allocation27_spill]] %s2024_s4 }
   0x5   :  { %2044 = sst [smem:[#allocation28_spill]] %s2025_s5 }
   0x6   :  { %2045 = sst [smem:[#allocation29_spill]] %s2026_s6 }
   0x7   :  { %12 = vsyncpa [#allocation3], 0 }
   0x8   :  { %14 = vsyncpa [#allocation3 + $0x1], 0 }
   0x9   :  { %15 = vsyncpa [#allocation6], 0 }
   0xa   :  { %17 = vsyncpa [#allocation6 + $0x1], 0 }
   0xb   :  { %18 = vsyncpa [#allocation9], 0 }
   0xc   :  { %19 = vsyncpa [#allocation4], 0 }
   0xd   :  { %21 = vsyncpa [#allocation4 + $0x1], 0 }
   0xe   :  { %22 = vsyncpa [#allocation13], 0 }
   0xf   :  { %24 = vsyncpa [#allocation13 + $0x1], 0  ;;  %s1560_s21 = smov 0   ;;  %s1562_s22 = smov 0  }
  0x10   :  { %s1564_s23 = smov 0   ;;  %s1566_s24 = smov 0  }
  0x11   :  { %s1568_s25 = smov 0   ;;  %s1570_s26 = smov 0  }
  0x12   :  { %s1572_s27 = smov 0   ;;  %s1574_s28 = smov 0  }
  0x13 LB: > { %2046 = sst [smem:[#allocation20_spill]] %s1477_s21  ;;  %s1601_s29 = sadd.s32 4294967295, %s1505_s28   ;;  %s1505_s28 = sphi %s1574_s28, %s30_s28   ;;  %s1501_s27 = sphi %s1572_s27, %s2085_s27   ;;  %s1497_s26 = sphi %s1570_s26, %s2084_s26   ;;  %s1493_s25 = sphi %s1568_s25, %s2083_s25   ;;  %s1489_s24 = sphi %s1566_s24, %s2082_s24   ;;  %s1485_s23 = sphi %s1564_s23, %s2081_s23   ;;  %s1481_s22 = sphi %s1562_s22, %s2080_s22   ;;  %s1477_s21 = sphi %s1560_s21, %s2079_s21  }
  0x14   : > { %s936_s30 = sadd.s32 4294967294, %s1505_s28   ;;  %p64_p0 = scmp.ne.s32.totalorder %s1481_s22, %s1477_s21 }
  0x15   : > { %p2027_p1 = scmp.eq.s32.totalorder %s1601_s29, 0  ;;  %p187_p3 = scmp.eq.s32.totalorder %s936_s30, 3 }
  0x16   : > { %p937_p5 = scmp.ge.s32.totalorder %s1505_s28, 1  ;;  %p222_p7 = scmp.lt.s32.totalorder %s1505_s28, 5 }
  0x17   : > { %p1610_p4 = por %p2027_p1, %p64_p0  ;;  %p1615_p6 = por %p187_p3, %p64_p0 }
  0x18   : > { %p1620_p8 = pnand %p937_p5, %p222_p7  ;;  %s1507_s10 = smov [#allocation7]  }
  0x19   : > { %s2047_s7 = scalar_select %p1610_p4, 1, 0 }
  0x1a   : > { %s2048_s8 = scalar_select %p1615_p6, 1, 0 }
  0x1b   : > { %s2050_s9 = scalar_select %p1620_p8, 1, 0 }
  0x1c   : > { %2049 = sst [smem:[#allocation21_spill]] %s2048_s8  ;;  %s234_s11 = sshll.u32 %s1507_s10, 4  ;;  %s1624_s11 = int_to_ptr.vmem [resolvable:$true] %s234_s11 }
  0x1d   : > { %p1090_p9 = pneg %p1620_p8  ;;  %s1508_s13 = smov [#allocation8]  }
  0x1e   : > { %s247_s14 = sshll.u32 %s1508_s13, 4  ;;  %s1509_s15 = smov [#allocation10]   ;;  %s1634_s14 = int_to_ptr.vmem [resolvable:$true] %s247_s14 }
  0x1f   : > { %p1630_p10 = pnand %p1090_p9, %p2027_p1  ;;  %s1636_s16 = sshll.u32 %s1509_s15, 4  ;;  %s261_s16 = int_to_ptr.vmem [resolvable:$true] %s1636_s16 }
  0x20   : > { %s2052_s2 = sld [smem:[#allocation25_spill]] }
  0x21   : > { %p1646_p12 = pneg %p1630_p10 }
  0x26   : > { %s1219_s19 = scalar_lea.hbm %s2052_s2, 128 }
  0x27   : > { %p1220_p11 = scmp.ne.s32.totalorder %s2052_s2, %s1219_s19  ;;  %p1226_p3 = scmp.lt.u32.totalorder %s1219_s19, %s2052_s2 }
  0x29   : > { %p1222_p13 = pnand %p1646_p12, %p1220_p11 }
  0x2b   : > { %p1223_p0 = pneg %p1222_p13 }
  0x2d   : > { %p1228_p5 = pnand %p1226_p3, %p1223_p0 }
  0x2f   : > { %1231 = shalt.err (!%p1228_p5)
}
  0x30   : > { %s1232_s17 = scalar_lea.vmem %s1624_s11, 128  ;;  %p1240_p2 = scmp.lt.s32.totalorder %s1624_s11, %s1624_s11 }
  0x31   : > { %p1233_p7 = scmp.ne.s32.totalorder %s1624_s11, %s1232_s17  ;;  %p1241_p6 = scmp.lt.s32.totalorder %s1232_s17, %s1232_s17 }
  0x33   : > { %p1235_p9 = pnand %p1233_p7, %p1646_p12  ;;  %p1242_p11 = por %p1241_p6, %p1240_p2 }
  0x35   : > { %p1236_p1 = pneg %p1235_p9 }
  0x37   : > { %p1243_p13 = pnand %p1242_p11, %p1236_p1 }
  0x39   : > { %1246 = shalt.err (!%p1243_p13)
}
  0x3a   : > { %s2034_s18 = smov 64   ;;  %s2036_s19 = smov 4  }
  0x3b   : > { %1093 = dma.hbm_to_vmem [thread:$0]  (!%p1630_p10), %s2052_s2, 128, %s1624_s11, [#allocation6], %s2034_s18, %s2034_s18, %s2036_s19  }
  0x3c   : > { %s2054_s3 = sld [smem:[#allocation26_spill]] }
  0x42   : > { %s1247_s17 = scalar_lea.hbm %s2054_s3, 128 }
  0x43   : > { %p1248_p1 = scmp.ne.s32.totalorder %s2054_s3, %s1247_s17  ;;  %p1254_p0 = scmp.lt.u32.totalorder %s1247_s17, %s2054_s3 }
  0x45   : > { %p1250_p2 = pnand %p1248_p1, %p1646_p12 }
  0x47   : > { %p1251_p6 = pneg %p1250_p2 }
  0x49   : > { %p1256_p3 = pnand %p1254_p0, %p1251_p6 }
  0x4b   : > { %1259 = shalt.err (!%p1256_p3)
}
  0x4c   : > { %s1260_s11 = scalar_lea.vmem %s1634_s14, 128  ;;  %p1268_p11 = scmp.lt.s32.totalorder %s1634_s14, %s1634_s14 }
  0x4d   : > { %p1261_p5 = scmp.ne.s32.totalorder %s1634_s14, %s1260_s11  ;;  %p1269_p13 = scmp.lt.s32.totalorder %s1260_s11, %s1260_s11 }
  0x4f   : > { %p1263_p7 = pnand %p1261_p5, %p1646_p12  ;;  %p1270_p1 = por %p1269_p13, %p1268_p11 }
  0x51   : > { %p1264_p9 = pneg %p1263_p7 }
  0x53   : > { %p1271_p2 = pnand %p1270_p1, %p1264_p9 }
  0x55   : > { %1274 = shalt.err (!%p1271_p2)
}
  0x56   : > { %1096 = dma.hbm_to_vmem [thread:$0]  (!%p1630_p10), %s2054_s3, 128, %s1634_s14, [#allocation9], %s2034_s18, %s2034_s18, %s2036_s19  }
  0x57   : > { %s2055_s4 = sld [smem:[#allocation27_spill]] }
  0x5d   : > { %s1275_s20 = scalar_lea.hbm %s2055_s4, 256 }
  0x5e   : > { %p1276_p6 = scmp.ne.s32.totalorder %s2055_s4, %s1275_s20  ;;  %p1282_p5 = scmp.lt.u32.totalorder %s1275_s20, %s2055_s4 }
  0x60   : > { %p1278_p0 = pnand %p1276_p6, %p1646_p12 }
  0x62   : > { %p1279_p3 = pneg %p1278_p0 }
  0x64   : > { %p1284_p7 = pnand %p1282_p5, %p1279_p3 }
  0x66   : > { %1287 = shalt.err (!%p1284_p7)
}
  0x67   : > { %s1288_s11 = scalar_lea.vmem %s261_s16, 256  ;;  %p1296_p1 = scmp.lt.s32.totalorder %s261_s16, %s261_s16 }
  0x68   : > { %p1289_p9 = scmp.ne.s32.totalorder %s261_s16, %s1288_s11  ;;  %p1297_p2 = scmp.lt.s32.totalorder %s1288_s11, %s1288_s11 }
  0x6a   : > { %p1291_p11 = pnand %p1289_p9, %p1646_p12  ;;  %p1298_p4 = por %p1297_p2, %p1296_p1 }
  0x6c   : > { %p1292_p13 = pneg %p1291_p11 }
  0x6e   : > { %p1299_p8 = pnand %p1298_p4, %p1292_p13 }
  0x70   : > { %1302 = shalt.err (!%p1299_p8)
}
  0x71   : > { %s1512_s14 = smov 128   ;;  %s1513_s10 = smov 8  }
  0x72   : > { %1099 = dma.hbm_to_vmem [thread:$0]  (!%p1630_p10), %s2055_s4, 256, %s261_s16, [#allocation9], %s1512_s14, %s1512_s14, %s1513_s10  }
  0x73   : > { %s39_s21 = sadd.s32 1, %s1497_s26  ;;  %s42_s8 = sadd.s32 1, %s1501_s27 }
  0x74   : > { %p40_p4 = scmp.ge.s32.totalorder %s39_s21, 2  ;;  %s51_s20 = sadd.s32 1, %s1485_s23 }
  0x75   : > { %p58_p8 = scmp.ne.s32.totalorder %s1485_s23, %s1481_s22  ;;  %p59_p12 = scmp.eq.s32.totalorder %s1505_s28, 0 }
  0x76   : > { %s2087_s21 = smov (%p40_p4, %s39_s21), 0  ;;  %s2089_s8 = smov (!%p40_p4, %s42_s8), %s1501_s27 }
  0x77   : > { %2056 = sst [smem:[#allocation22_spill]] %s2087_s21  ;;  %s47_s30 = ssub.s32 %s1497_s26, %s2087_s21 }
  0x78   : > { %p44_p6 = scmp.ge.s32.totalorder %s2089_s8, 2  ;;  %p2057_p0 = scmp.eq.s32.totalorder %s1601_s29, 3 }
  0x79   : > { %p1732_p10 = por %p59_p12, %p58_p8  ;;  %p1117_p5 = scmp.lt.s32.totalorder %s1505_s28, 4 }
  0x7a   : > { %p1728_p3 = por %p2057_p0, %p58_p8  ;;  %s2091_s8 = smov (%p44_p6, %s2089_s8), 0 }
  0x7b   : > { %2060 = sst [smem:[#allocation23_spill]] %s2091_s8  ;;  %s274_s13 = sand.u32 1, %s1485_s23  }
  0x7c   : > { %s995_s15 = sshll.u32 %s1497_s26, 4  ;;  %s46_s17 = ssub.s32 %s1501_s27, %s2091_s8 }
  0x7d   : > { %s48_s11 = sor.u32 %s47_s30, %s46_s17  ;;  %s1743_s14 = sshll.u32 %s274_s13, 6 }
  0x7e   : > { %p49_p7 = scmp.eq.s32.totalorder %s48_s11, 0  ;;  %s945_s10 = sshll.u32 %s1501_s27, 5 }
  0x7f   : > { %s278_s5 = scalar_lea.vmem [#allocation2], %s1743_s14  ;;  %s285_s19 = sadd.s32 %s995_s15, %s945_s10 }
  0x80   : > { %s288_s6 = sshll.u32 %s278_s5, 4  ;;  %s946_s2 = sshll.u32 %s285_s19, 6  ;;  %s1750_s6 = int_to_ptr.vmem [resolvable:$true] %s288_s6 }
  0x81   : > { %s1748_s18 = scalar_select %p49_p7, %s1485_s23, %s51_s20  }
  0x82   : > { %p1756_p9 = pnand %p1117_p5, %p1732_p10  ;;  %s2062_s0 = sld [smem:[#allocation24_spill]] }
  0x83   : > { %s1768_s19 = scalar_lea.hbm %s2021_s1, %s946_s2  ;;  %s1770_s16 = scalar_lea.sflag [#allocation3], %s274_s13 }
  0x84   : > { %p1305_p13 = pneg %p1756_p9 }
  0x88   : > { %s1763_s11 = scalar_lea.hbm %s2062_s0, %s946_s2  ;;  %s1308_s17 = scalar_lea.hbm %s2062_s0, 4096 }
  0x89   : > { %s1303_s15 = scalar_lea.hbm %s1763_s11, 1024  ;;  %p1309_p4 = scmp.lt.u32.totalorder %s1763_s11, %s2062_s0 }
  0x8a   : > { %p1304_p11 = scmp.ne.s32.totalorder %s1763_s11, %s1303_s15  ;;  %p1310_p8 = scmp.lt.u32.totalorder %s1308_s17, %s1303_s15 }
  0x8b   : > { %p1312_p6 = scmp.lt.u32.totalorder %s1303_s15, %s1763_s11 }
  0x8c   : > { %p1306_p1 = pnand %p1305_p13, %p1304_p11  ;;  %p1311_p12 = por %p1310_p8, %p1309_p4 }
  0x8e   : > { %p1307_p2 = pneg %p1306_p1  ;;  %p1313_p0 = por %p1312_p6, %p1311_p12 }
  0x90   : > { %p1314_p10 = pnand %p1313_p0, %p1307_p2 }
  0x92   : > { %1317 = shalt.err (!%p1314_p10)
}
  0x93   : > { %s1318_s2 = scalar_lea.vmem %s1750_s6, 1024  ;;  %s1514_s13 = smov [#allocation2]  }
  0x94   : > { %p1319_p5 = scmp.ne.s32.totalorder %s1750_s6, %s1318_s2  ;;  %s1323_s10 = sshll.u32 %s1514_s13, 4  ;;  %s1324_s10 = int_to_ptr.vmem [resolvable:$false] %s1323_s10 }
  0x95   : > { %s1325_s30 = scalar_lea.vmem %s1324_s10, 2048  ;;  %p1326_p1 = scmp.lt.s32.totalorder %s1750_s6, %s1324_s10 }
  0x96   : > { %p1321_p7 = pnand %p1319_p5, %p1305_p13  ;;  %p1327_p4 = scmp.lt.s32.totalorder %s1325_s30, %s1318_s2 }
  0x98   : > { %p1322_p11 = pneg %p1321_p7  ;;  %p1328_p8 = por %p1327_p4, %p1326_p1 }
  0x9a   : > { %p1329_p12 = pnand %p1328_p8, %p1322_p11 }
  0x9c   : > { %1332 = shalt.err (!%p1329_p12)
}
  0x9d   : > { %s2063_s15 = smov 4   ;;  %s2064_s17 = smov 64  }
  0x9e   : > { %1103 = dma.hbm_to_vmem [thread:$0]  (!%p1756_p9), %s1763_s11, 1024, %s1750_s6, %s1770_s16, %s2064_s17, %s2064_s17, %s2063_s15  }
  0x9f   : > { %s302_s5 = scalar_lea.vmem [#allocation5], %s1743_s14  ;;  %s298_s2 = sand.u32 1, %s1505_s28  }
  0xa0   : > { %s312_s20 = sshll.u32 %s302_s5, 4  ;;  %s1805_s13 = scalar_lea.sflag [#allocation6], %s298_s2  ;;  %s1803_s20 = int_to_ptr.vmem [resolvable:$true] %s312_s20 }
  0xa1   : > { %s1333_s10 = scalar_lea.hbm %s1768_s19, 1024  ;;  %s1338_s4 = scalar_lea.hbm %s2021_s1, 4096 }
  0xa2   : > { %p1334_p2 = scmp.ne.s32.totalorder %s1768_s19, %s1333_s10  ;;  %p1339_p10 = scmp.lt.u32.totalorder %s1768_s19, %s2021_s1 }
  0xa3   : > { %p1340_p5 = scmp.lt.u32.totalorder %s1338_s4, %s1333_s10  ;;  %p1342_p11 = scmp.lt.u32.totalorder %s1333_s10, %s1768_s19 }
  0xa4   : > { %p1336_p6 = pnand %p1334_p2, %p1305_p13 }
  0xa5   : > { %p1341_p7 = por %p1340_p5, %p1339_p10 }
  0xa6   : > { %p1337_p0 = pneg %p1336_p6 }
  0xa7   : > { %p1343_p1 = por %p1342_p11, %p1341_p7 }
  0xa9   : > { %p1344_p4 = pnand %p1343_p1, %p1337_p0 }
  0xab   : > { %1347 = shalt.err (!%p1344_p4)
}
  0xac   : > { %s1348_s14 = scalar_lea.vmem %s1803_s20, 1024  ;;  %s1515_s0 = smov [#allocation5]  }
  0xad   : > { %p1349_p8 = scmp.ne.s32.totalorder %s1803_s20, %s1348_s14  ;;  %s1353_s6 = sshll.u32 %s1515_s0, 4  ;;  %s1354_s6 = int_to_ptr.vmem [resolvable:$false] %s1353_s6 }
  0xae   : > { %s1355_s21 = scalar_lea.vmem %s1354_s6, 2048  ;;  %p1356_p6 = scmp.lt.s32.totalorder %s1803_s20, %s1354_s6 }
  0xaf   : > { %p1351_p12 = pnand %p1349_p8, %p1305_p13  ;;  %p1357_p10 = scmp.lt.s32.totalorder %s1355_s21, %s1348_s14 }
  0xb1   : > { %p1352_p2 = pneg %p1351_p12  ;;  %p1358_p5 = por %p1357_p10, %p1356_p6 }
  0xb3   : > { %p1359_p7 = pnand %p1358_p5, %p1352_p2 }
  0xb5   : > { %1362 = shalt.err (!%p1359_p7)
}
  0xb6   : > { %1106 = dma.hbm_to_vmem [thread:$0]  (!%p1756_p9), %s1768_s19, 1024, %s1803_s20, %s1805_s13, %s2064_s17, %s2064_s17, %s2063_s15  }
  0xb7   : > { %p2065_p13 = scmp.ne.s32.totalorder %s2050_s9, 0 }
  0xb8   : > { %s1837_s4 = sand.u32 (!%p2065_p13), 1, %s1481_s22   ;;  %p2066_p0 = scmp.ne.s32.totalorder (!%p2065_p13), %s2047_s7, 0 }
  0xb9   : > { %324 = sbr.rel (%p2065_p13) target bundleno = 666 (0x29a), region = 40  ;;  %s953_s8 = sshll.u32 (!%p2065_p13), %s1837_s4, 6 }
  0xba   : > { %s327_s11 = scalar_lea.sflag (!%p2065_p13), [#allocation3], %s1837_s4  ;;  %s1841_s16 = scalar_lea.vmem (!%p2065_p13), [#allocation2], %s953_s8 }
  0xc0   : > { %1452 = dma.done.wait (%p2066_p0), %s327_s11, 1024  }
  0xc1   : > { %1454 = vsyncadd (%p2066_p0), %s327_s11, 4294966272  ;;  %s335_s3 = sand.u32 1, %s1601_s29   ;;  %s1848_s19 = scalar_lea.vmem [#allocation5], %s953_s8 }
  0xc2   : > { %s336_s9 = scalar_lea.sflag [#allocation6], %s335_s3 }
  0xc3   : > { %1456 = dma.done.wait (%p2066_p0), %s336_s9, 1024  }
  0xc4   : > { %1458 = vsyncadd (%p2066_p0), %s336_s9, 4294966272  ;;  %p2067_p9 = scmp.eq.s32.totalorder %s1601_s29, 0 }
  0xc6   : > { %1460 = dma.done.wait (%p2067_p9), [#allocation6], 128   ;;  %p2068_p11 = pmov %p2067_p9 }
  0xc7   : > { %p2069_p1 = pmov %p2067_p9 }
  0xc8   : > { %1462 = vsyncadd (%p2068_p11), [#allocation6], 4294967168 }
  0xc9   : > { %1464 = dma.done.wait (%p2069_p1), [#allocation9], 384   ;;  %p2070_p4 = pmov %p2069_p1 }
  0xca   : > { %v1516_v0 = vmov 0.0   ;;  %vm1517_vm0 = vmmov 0   ;;  %v1518_v1 = vmov 0   ;;  %vm484_vm1 = vcmask 392192   ;;  %v1201_v2 = vld [vmem:[%s1841_s16] sm:$0xff]   ;;  %v1203_v6 = vld [vmem:[%s1841_s16 + $0x8] sm:$0xff]  }
  0xcb   : > { %1466 = vsyncadd (%p2070_p4), [#allocation9], 4294966912  ;;  %1030 = vmatprep.subr.bf16.mxu0 %v1516_v0  ;;  %1050 = vmatprep.subr.bf16.mxu1 %v1516_v0  ;;  %v1202_v3 = vld [vmem:[%s1848_s19] sm:$0xff]   ;;  %v489_v4 = vsel %vm484_vm1, %v1201_v2, 0  ;;  %v1204_v7 = vld [vmem:[%s1848_s19 + $0x8] sm:$0xff]   ;;  %v492_v8 = vsel %vm484_vm1, %v1203_v6, 0 }
  0xcc   : > { %1046 = vmatprep.mubr.msk.bf16.mxu0 %vm1517_vm0, %v1516_v0  ;;  %1066 = vmatprep.mubr.msk.bf16.mxu1 %vm1517_vm0, %v1516_v0  ;;  %v604_v5 = vsel %vm484_vm1, %v1202_v3, 0  ;;  %v607_v9 = vsel %vm484_vm1, %v1204_v7, 0  ;;  %v1205_v10 = vld [vmem:[%s1841_s16 + $0x10] sm:$0xff]   ;;  %v1207_v15 = vld [vmem:[%s1841_s16 + $0x18] sm:$0xff]   ;;  %v1209_v20 = vld [vmem:[%s1841_s16 + $0x20] sm:$0xff]   ;;  %s958_s29 = sshll.u32 %s1837_s4, 4 }
  0xcd   : > { %1200 = vset.pattern.permute.xlu0 %v1518_v1  ;;  %1031 = vmatpush3.bf16.xpose.msra.mxu0 %v489_v4  ;;  %v1206_v11 = vld [vmem:[%s1848_s19 + $0x10] sm:$0xff]   ;;  %v495_v12 = vsel %vm484_vm1, %v1205_v10, 0  ;;  %v428_v16 = vld [vmem:[#allocation10 + $0x8] sm:$0xff]  ;;  %v498_v18 = vsel %vm484_vm1, %v1207_v15, 0  ;;  %v1210_v21 = vld [vmem:[%s1848_s19 + $0x20] sm:$0xff]   ;;  %v501_v22 = vsel %vm484_vm1, %v1209_v20, 0 }
  0xce   : > { %1051 = vmatpush3.bf16.xpose.msra.mxu1 %v604_v5  ;;  %1032 = vmatprep.subr.bf16.mxu0 %v1516_v0  ;;  %v610_v13 = vsel %vm484_vm1, %v1206_v11, 0  ;;  %v427_v14 = vld [vmem:[#allocation10] sm:$0xff]  ;;  %v1208_v17 = vld [vmem:[%s1848_s19 + $0x18] sm:$0xff]   ;;  %v616_v23 = vsel %vm484_vm1, %v1210_v21, 0  ;;  %v1211_v24 = vld [vmem:[%s1841_s16 + $0x28] sm:$0xff]   ;;  %s382_s7 = scalar_lea.vmem [#allocation11], %s958_s29 }
  0xcf   : > { %1052 = vmatprep.subr.bf16.mxu1 %v1516_v0  ;;  %431 = vperm.xlu0 %1200, %v427_v14   ;;  %v613_v19 = vsel %vm484_vm1, %v1208_v17, 0  ;;  %v1212_v25 = vld [vmem:[%s1848_s19 + $0x28] sm:$0xff]   ;;  %v504_v26 = vsel %vm484_vm1, %v1211_v24, 0  ;;  %v1213_v28 = vld [vmem:[%s1841_s16 + $0x30] sm:$0xff]   ;;  %v1215_v32 = vld [vmem:[%s1841_s16 + $0x38] sm:$0xff]   ;;  %s739_s15 = sshll.u32 %s382_s7, 4  ;;  %s1918_s15 = int_to_ptr.vmem [resolvable:$true] %s739_s15 }
  0xd0   : > { %v619_v27 = vsel %vm484_vm1, %v1212_v25, 0  ;;  %v1214_v29 = vld [vmem:[%s1848_s19 + $0x30] sm:$0xff]   ;;  %v507_v30 = vsel %vm484_vm1, %v1213_v28, 0  ;;  %v1216_v33 = vld [vmem:[%s1848_s19 + $0x38] sm:$0xff]   ;;  %v510_v34 = vsel %vm484_vm1, %v1215_v32, 0  ;;  %v1217_v36 = vld [vmem:[#allocation7] sm:$0xff]  }
  0xd1   : > { %v622_v31 = vsel %vm484_vm1, %v1214_v29, 0  ;;  %v625_v35 = vsel %vm484_vm1, %v1216_v33, 0  ;;  %v1218_v37 = vld [vmem:[#allocation8] sm:$0xff]   ;;  %s988_s17 = sshll.u32 %s1493_s25, 3  ;;  %s2071_s10 = sld [smem:[#allocation28_spill]] }
  0xd2   : > { %s736_s5 = sadd.s32 %s1489_s24, %s988_s17  ;;  %s720_s14 = scalar_lea.sflag [#allocation4], %s1837_s4 }
  0xd3   : > { %436 = vperm.xlu0 %1200, %v428_v16   ;;  %s989_s20 = sshll.u32 %s736_s5, 6  ;;  %s1363_s0 = scalar_lea.vmem %s1918_s15, 256 }
  0xd4   : > { %p1364_p8 = scmp.ne.s32.totalorder %s1918_s15, %s1363_s0  ;;  %s1519_s6 = smov [#allocation11]  }
  0xd5   : > { %1033 = vmatpush3.bf16.xpose.msra.mxu0 %v492_v8  ;;  %s1367_s21 = sshll.u32 %s1519_s6, 4  ;;  %s1368_s21 = int_to_ptr.vmem [resolvable:$false] %s1367_s21 }
  0xd6   : > { %1053 = vmatpush3.bf16.xpose.msra.mxu1 %v607_v9  ;;  %1034 = vmatprep.subr.bf16.mxu0 %v1516_v0  ;;  %p1365_p12 = pnand %p1364_p8, %p1728_p3  ;;  %s1369_s8 = scalar_lea.vmem %s1368_s21, 512 }
  0xd7   : > { %1054 = vmatprep.subr.bf16.mxu1 %v1516_v0  ;;  %s1924_s30 = scalar_lea.hbm %s2071_s10, %s989_s20  ;;  %p1370_p6 = scmp.lt.s32.totalorder %s1918_s15, %s1368_s21 }
  0xd8   : > { %p1366_p2 = pneg %p1365_p12  ;;  %p1371_p10 = scmp.lt.s32.totalorder %s1369_s8, %s1363_s0 }
  0xda   : > { %p1372_p5 = por %p1371_p10, %p1370_p6 }
  0xdc   : > { %p1373_p7 = pnand %p1372_p5, %p1366_p2 }
  0xdd   : > { %1035 = vmatpush3.bf16.xpose.msra.mxu0 %v495_v12 }
  0xde   : > { %1055 = vmatpush3.bf16.xpose.msra.mxu1 %v610_v13  ;;  %1036 = vmatprep.subr.bf16.mxu0 %v1516_v0 }
  0xdf   : > { %1056 = vmatprep.subr.bf16.mxu1 %v1516_v0 }
  0xe5   : > { %1037 = vmatpush3.bf16.xpose.msra.mxu0 %v498_v18 }
  0xe6   : > { %1057 = vmatpush3.bf16.xpose.msra.mxu1 %v613_v19  ;;  %1038 = vmatprep.subr.bf16.mxu0 %v1516_v0 }
  0xe7   : > { %1058 = vmatprep.subr.bf16.mxu1 %v1516_v0 }
  0xed   : > { %1039 = vmatpush3.bf16.xpose.msra.mxu0 %v501_v22 }
  0xee   : > { %1059 = vmatpush3.bf16.xpose.msra.mxu1 %v616_v23  ;;  %1040 = vmatprep.subr.bf16.mxu0 %v1516_v0 }
  0xef   : > { %1060 = vmatprep.subr.bf16.mxu1 %v1516_v0 }
  0xf5   : > { %1041 = vmatpush3.bf16.xpose.msra.mxu0 %v504_v26 }
  0xf6   : > { %1061 = vmatpush3.bf16.xpose.msra.mxu1 %v619_v27  ;;  %1042 = vmatprep.subr.bf16.mxu0 %v1516_v0 }
  0xf7   : > { %1062 = vmatprep.subr.bf16.mxu1 %v1516_v0 }
  0xfd   : > { %1043 = vmatpush3.bf16.xpose.msra.mxu0 %v507_v30 }
  0xfe   : > { %1063 = vmatpush3.bf16.xpose.msra.mxu1 %v622_v31  ;;  %1044 = vmatprep.subr.bf16.mxu0 %v1516_v0 }
  0xff   : > { %1064 = vmatprep.subr.bf16.mxu1 %v1516_v0 }
 0x105   : > { %1045 = vmatpush3.bf16.xpose.msra.mxu0 %v510_v34 }
 0x106   : > { %1065 = vmatpush3.bf16.xpose.msra.mxu1 %v625_v35 }
 0x10c   : > { %1047 = vmatmul.mubr.msk.bf16.vlgmr.msra.gmra.mrb[0].mxu0 %vm484_vm1, %v1217_v36 }
 0x10d   : > { %1067 = vmatmul.mubr.msk.bf16.vlgmr.msra.gmra.mrb[0].mxu1 %vm484_vm1, %v1218_v37 }
 0x14e   : > { %v432_v38 = vpop.permute.xlu0 %431 }
 0x152   : > { %v437_v39 = vpop.permute.xlu0 %436 }
 0x1df   : > { %v546_v40 = vpop.f32.mrb[0].mxu0 }
 0x1e0   : > { %v547_v41 = vadd.f32 %v546_v40, %v432_v38  ;;  %v661_v42 = vpop.f32.mrb[0].mxu1  ;;  %v1048_v43 = vpop.f32.mrb[1].mxu0 }
 0x1e1   : > { %v662_v44 = vadd.f32 %v661_v42, %v432_v38  ;;  %v1068_v45 = vpop.f32.mrb[1].mxu1  ;;  %v549_v46 = vpop.f32.mrb[2].mxu0 }
 0x1e2   : > { %v550_v47 = vadd.f32 %v549_v46, %v437_v39  ;;  %v664_v48 = vpop.f32.mrb[2].mxu1  ;;  %689 = vadd.xlane.f32.xlu1 %v547_v41  ;;  %v1049_v49 = vpop.f32.mrb[3].mxu0  ;;  %v699_v54 = vmul.f32 %v547_v41, %v547_v41 }
 0x1e3   : > { %v665_v50 = vadd.f32 %v664_v48, %v437_v39  ;;  %693 = vadd.xlane.f32.xlu0 %v662_v44  ;;  %v1069_v51 = vpop.f32.mrb[3].mxu1  ;;  %v705_v55 = vmul.f32 %v662_v44, %v662_v44 }
 0x1e4   : > { %v1004_v52 = vpack.c.bf16 %v550_v47, %v547_v41  ;;  %v700_v56 = vmul.f32 %v550_v47, %v550_v47 }
 0x1e5   : > { %v1009_v53 = vpack.c.bf16 %v665_v50, %v662_v44  ;;  %v706_v57 = vmul.f32 %v665_v50, %v665_v50 }
 0x1e6   : > { %1005 = vst [vmem:[%s382_s7] sm:$0xff] %v1004_v52   ;;  %691 = vadd.xlane.f32.xlu1 %v550_v47 }
 0x1e7   : > { %1011 = vst [vmem:[%s382_s7 + $0x8] sm:$0xff] %v1009_v53  }
 0x1ea   : > { %695 = vadd.xlane.f32.xlu1 %v665_v50 }
 0x1ee   : > { %701 = vadd.xlane.f32.xlu1 %v699_v54 }
 0x1f2   : > { %707 = vadd.xlane.f32.xlu1 %v705_v55 }
 0x1f6   : > { %703 = vadd.xlane.f32.xlu1 %v700_v56 }
 0x1fa   : > { %709 = vadd.xlane.f32.xlu1 %v706_v57 }
 0x1fb   : > { %1376 = shalt.err (!%p1373_p7)
}
 0x1fc   : > { %s1377_s11 = scalar_lea.hbm %s1924_s30, 256  ;;  %s1381_s9 = scalar_lea.hbm %s2071_s10, 1024 }
 0x1fd   : > { %p1378_p13 = scmp.ne.s32.totalorder %s1924_s30, %s1377_s11  ;;  %p1382_p11 = scmp.lt.u32.totalorder %s1924_s30, %s2071_s10 }
 0x1fe   : > { %p1383_p1 = scmp.lt.u32.totalorder %s1381_s9, %s1377_s11  ;;  %p1385_p8 = scmp.lt.u32.totalorder %s1377_s11, %s1924_s30 }
 0x1ff   : > { %p1379_p0 = pnand %p1378_p13, %p1728_p3 }
 0x200   : > { %p1384_p4 = por %p1383_p1, %p1382_p11 }
 0x201   : > { %p1380_p9 = pneg %p1379_p0 }
 0x202   : > { %p1386_p12 = por %p1385_p8, %p1384_p4 }
 0x204   : > { %p1387_p2 = pnand %p1386_p12, %p1380_p9 }
 0x206   : > { %1390 = shalt.err (!%p1387_p2)
}
 0x207   : > { %s1520_s17 = smov 64   ;;  %s1521_s5 = smov 128   ;;  %vm713_vm2 = vcmask 7168   ;;  %vm716_vm3 = vcmask 15360  }
 0x208   : > { %s1522_s20 = smov 4   ;;  %s990_s2 = sshll.u32 %s1489_s24, 1 }
 0x209   : > { %1086 = dma.vmem_to_hbm [thread:$0]  (%p1728_p3), %s1918_s15, 256, %s1924_s30, %s720_s14, %s1520_s17, %s1521_s5, %s1522_s20  }
 0x20a   : > { %s991_s13 = sshll.u32 %s1493_s25, 2  ;;  %s389_s0 = scalar_lea.vmem [#allocation12], %s958_s29 }
 0x20b   : > { %s754_s15 = sadd.s32 %s991_s13, %s990_s2  ;;  %s757_s30 = sshll.u32 %s389_s0, 4  ;;  %s1957_s30 = int_to_ptr.vmem [resolvable:$true] %s757_s30 }
 0x20c   : > { %s992_s14 = sshll.u32 %s754_s15, 7  ;;  %s2072_s21 = sld [smem:[#allocation29_spill]] }
 0x20d   : > { %s725_s29 = scalar_lea.sflag [#allocation13], %s1837_s4  ;;  %s1391_s11 = scalar_lea.vmem %s1957_s30, 256 }
 0x20e   : > { %p1392_p6 = scmp.ne.s32.totalorder %s1957_s30, %s1391_s11  ;;  %s1523_s16 = smov [#allocation12]  }
 0x20f   : > { %s1395_s3 = sshll.u32 %s1523_s16, 4  ;;  %s1396_s3 = int_to_ptr.vmem [resolvable:$false] %s1395_s3 }
 0x210   : > { %p1393_p10 = pnand %p1392_p6, %p1728_p3  ;;  %s1397_s9 = scalar_lea.vmem %s1396_s3, 512 }
 0x211   : > { %p1398_p7 = scmp.lt.s32.totalorder %s1957_s30, %s1396_s3  ;;  %p1399_p13 = scmp.lt.s32.totalorder %s1397_s9, %s1391_s11 }
 0x212   : > { %s2073_s8 = smov %s2072_s21  ;;  %s1962_s25 = scalar_lea.hbm %s2072_s21, %s992_s14 }
 0x213   : > { %p1394_p5 = pneg %p1393_p10  ;;  %p1400_p0 = por %p1399_p13, %p1398_p7 }
 0x215   : > { %p1401_p9 = pnand %p1400_p0, %p1394_p5 }
 0x26f   : > { %v690_v58 = vpop.xlane.xlu1 %689 }
 0x270   : > { %v694_v62 = vpop.xlane.xlu0 %693 }
 0x271   : > { %v697_v0 = vadd.f32 %v694_v62, %v690_v58 }
 0x273   : > { %v692_v59 = vpop.xlane.xlu1 %691 }
 0x277   : > { %v696_v60 = vpop.xlane.xlu1 %695 }
 0x278   : > { %v698_v5 = vadd.f32 %v696_v60, %v692_v59 }
 0x27b   : > { %v702_v61 = vpop.xlane.xlu1 %701 }
 0x27f   : > { %v708_v63 = vpop.xlane.xlu1 %707 }
 0x280   : > { %v711_v1 = vadd.f32 %v708_v63, %v702_v61 }
 0x282   : > { %v714_v2 = vsel %vm713_vm2, %v697_v0, %v711_v1 }
 0x283   : > { %717 = vst.msk [vmem:[%s389_s0] sm:$0xff] %vm716_vm3, %v714_v2  ;;  %v704_v3 = vpop.xlane.xlu1 %703 }
 0x287   : > { %v710_v4 = vpop.xlane.xlu1 %709 }
 0x288   : > { %v712_v6 = vadd.f32 %v710_v4, %v704_v3 }
 0x28a   : > { %v715_v7 = vsel %vm713_vm2, %v698_v5, %v712_v6 }
 0x28b   : > { %718 = vst.msk [vmem:[%s389_s0 + $0x8] sm:$0xff] %vm716_vm3, %v715_v7 }
 0x28c   : > { %1404 = shalt.err (!%p1401_p9)
}
 0x28d   : > { %s1405_s19 = scalar_lea.hbm %s1962_s25, 256  ;;  %s1409_s20 = scalar_lea.hbm %s2073_s8, 1024 }
 0x28e   : > { %p1406_p11 = scmp.ne.s32.totalorder %s1962_s25, %s1405_s19  ;;  %p1410_p8 = scmp.lt.u32.totalorder %s1962_s25, %s2073_s8 }
 0x28f   : > { %p1411_p12 = scmp.lt.u32.totalorder %s1409_s20, %s1405_s19  ;;  %p1413_p6 = scmp.lt.u32.totalorder %s1405_s19, %s1962_s25 }
 0x290   : > { %p1407_p1 = pnand %p1406_p11, %p1728_p3 }
 0x291   : > { %p1412_p2 = por %p1411_p12, %p1410_p8 }
 0x292   : > { %p1408_p4 = pneg %p1407_p1 }
 0x293   : > { %p1414_p10 = por %p1413_p6, %p1412_p2 }
 0x295   : > { %p1415_p5 = pnand %p1414_p10, %p1408_p4 }
 0x297   : > { %1418 = shalt.err (!%p1415_p5)
}
 0x298   : > { %s1524_s0 = smov 8  }
 0x299   : > { %1087 = dma.vmem_to_hbm [thread:$0]  (%p1728_p3), %s1957_s30, 256, %s1962_s25, %s725_s29, %s1521_s5, %s1521_s5, %s1524_s0  }
 0x29a PF: > { %s2074_s15 = sld [smem:[#allocation20_spill]]  ;;  %s2075_s14 = sld [smem:[#allocation21_spill]] }
 0x29b   : > { %p1121_p7 = scmp.ge.s32.totalorder %s1505_s28, 2 }
 0x2a0   : > { %s772_s6 = sand.u32 1, %s2074_s15   ;;  %p2076_p13 = scmp.ne.s32.totalorder %s2075_s14, 0 }
 0x2a1   : > { %s773_s24 = scalar_lea.sflag [#allocation4], %s772_s6 }
 0x2a2   : > { %p1108_p0 = pnand %p1121_p7, %p2076_p13 }
 0x2a4   : > { %1468 = dma.done.wait (!%p1108_p0), %s773_s24, 256  }
 0x2a5   : > { %1470 = vsyncadd (!%p1108_p0), %s773_s24, 4294967040  ;;  %s782_s21 = scalar_lea.sflag [#allocation13], %s772_s6 }
 0x2a6   : > { %1472 = dma.done.wait (!%p1108_p0), %s782_s21, 256  }
 0x2a7   : > { %1474 = vsyncadd (!%p1108_p0), %s782_s21, 4294967040  ;;  %s30_s28 = sadd.s32 1, %s1505_s28   ;;  %s2077_s12 = sld [smem:[#allocation22_spill]] }
 0x2a8   : > { %p27_p9 = scmp.ge.s32.totalorder %s30_s28, 6   ;;  %s2078_s4 = sld [smem:[#allocation23_spill]] }
 0x2a9   : > { %s2079_s21 = smov %s1481_s22  ;;  %s2080_s22 = smov %s1485_s23 }
 0x2aa   : > { %s2081_s23 = smov %s1748_s18  ;;  %s2082_s24 = smov %s1497_s26 }
 0x2ab   : > { %s2083_s25 = smov %s1501_s27  ;;  %29 = sbr.rel (!%p27_p9) target bundleno = 19 (0x13), region = 128 }
 0x2ad   : > { %s2084_s26 = smov %s2077_s12 }
 0x2ae   : > { %s2085_s27 = smov %s2078_s4 }
 0x2b2   :  { %787 = vsyncpa [#allocation3], 1 }
 0x2b3   :  { %789 = vsyncpa [#allocation3 + $0x1], 1 }
 0x2b4   :  { %790 = vsyncpa [#allocation6], 1 }
 0x2b5   :  { %792 = vsyncpa [#allocation6 + $0x1], 1 }
 0x2b6   :  { %793 = vsyncpa [#allocation9], 1 }
 0x2b7   :  { %794 = vsyncpa [#allocation4], 1 }
 0x2b8   :  { %796 = vsyncpa [#allocation4 + $0x1], 1 }
 0x2b9   :  { %797 = vsyncpa [#allocation13], 1 }
 0x2ba   :  { %799 = vsyncpa [#allocation13 + $0x1], 1 }

</bundles_post_ra>
